<compile_context>
chip_gen: v7x
topology: tpu7x:2x2x1
jax: 0.10.0
libtpu: 0.0.40
codegen_flags: <defaults>
</compile_context>

<pallas_src>
import jax
import jax.numpy as jnp
from jax import lax
from jax.experimental import pallas as pl
from jax.experimental.pallas import tpu as pltpu


def _round_up(x: int, m: int) -> int:
    return (x + m - 1) // m * m


# lhs dim 1 contracted with rhs dim 1  ->  lhs @ rhs.T  (rhs streamed transposed)
_NT_DIM_NUMBERS = (((1,), (1,)), ((), ()))


def _make_actor_kernel(max_action: float, action_dim: int):
    """Whole forward pass fused; weights resident in VMEM, batch tiled by grid."""
    # NOTE: max_action must be a Python scalar (env metadata); it is specialized
    # at trace time. A traced/array max_action would mis-specialize here.
    apply_scale = float(max_action) != 1.0

    def kernel(x_ref,
               w1_ref, b1_ref,
               w2_ref, b2_ref,
               w3_ref, b3_ref,
               wot_ref, bot_ref,
               out_ref):
        cdt = w1_ref.dtype  # compute dtype fixed at prepare_params time (bf16 default)

        x = x_ref[...].astype(cdt)

        # fc1 + ReLU (f32 accumulation / epilogue)
        h = jnp.dot(x, w1_ref[...], preferred_element_type=jnp.float32) + b1_ref[...]
        h = jnp.maximum(h, 0.0).astype(cdt)

        # fc2 + ReLU
        h = jnp.dot(h, w2_ref[...], preferred_element_type=jnp.float32) + b2_ref[...]
        h = jnp.maximum(h, 0.0).astype(cdt)

        # fc3 + ReLU
        h = jnp.dot(h, w3_ref[...], preferred_element_type=jnp.float32) + b3_ref[...]
        h = jnp.maximum(h, 0.0).astype(cdt)

        # Transposed action head: (head_rows, hidden) x (tile_m, hidden)^T
        #   -> (head_rows, tile_m); output is lane-dense along the batch tile.
        a_t = lax.dot_general(wot_ref[...], h, _NT_DIM_NUMBERS,
                              preferred_element_type=jnp.float32)
        a_t = a_t[:action_dim, :] + bot_ref[...]   # keep only real action rows
        a_t = jnp.tanh(a_t)                        # tanh on 4*tile_m elems, not 128*tile_m
        if apply_scale:
            a_t = max_action * a_t
        out_ref[...] = a_t.astype(out_ref.dtype)

    return kernel


def _choose_tile_m(batch: int, max_tile: int = 4096) -> int:
    """Batch-tile size: exact single block for small batches, otherwise an even
    number of <=max_tile-row tiles (both v7x TensorCores get work), each a
    multiple of 128 rows so the lane-dense output block stays legal."""
    if batch <= 512:
        return batch                       # one exact block, no padding/partial blocks
    steps = max(2, pl.cdiv(batch, max_tile))
    if steps % 2:
        steps += 1                         # even grid -> both v7x TCs busy
    return _round_up(pl.cdiv(batch, steps), 128)


def prepare_params(params, compute_dtype=jnp.bfloat16):
    """One-time parameter packing (hoisted out of the per-call path).

    Casts weights to `compute_dtype` (bf16 default for MXU/bandwidth), stores the
    action head transposed and sublane-padded to a multiple of 8 rows. Biases
    stay f32 (added to the f32 accumulator)."""
    w1, b1, w2, b2, w3, b3, wo, bo = params
    hidden, action_dim = wo.shape
    head_rows = _round_up(action_dim, 8)

    wo_t = jnp.zeros((head_rows, hidden), compute_dtype)
    wo_t = wo_t.at[:action_dim, :].set(wo.T.astype(compute_dtype))
    bo_t = bo.reshape(action_dim, 1).astype(jnp.float32)

    return (w1.astype(compute_dtype), b1.astype(jnp.float32),
            w2.astype(compute_dtype), b2.astype(jnp.float32),
            w3.astype(compute_dtype), b3.astype(jnp.float32),
            wo_t, bo_t)


def actor_forward(x, params, max_action, *, out_dtype=jnp.float32, max_tile=4096):
    """x: [batch, obs_size + goal_size].  Returns [batch, action_dim] actions.

    `params` must come from prepare_params(). Set out_dtype=jnp.bfloat16 to also
    halve the (already tiny) output writes if bit parity is not required."""
    w1, b1, w2, b2, w3, b3, wo_t, bo_t = params
    batch, in_dim = x.shape
    action_dim = bo_t.shape[0]

    tile_m = _choose_tile_m(batch, max_tile)
    grid = (pl.cdiv(batch, tile_m),)       # partial tail block handled by Pallas

    def resident(arr):                     # weights/biases: same block every step -> VMEM resident
        return pl.BlockSpec(arr.shape, lambda i: (0, 0))

    out_t = pl.pallas_call(
        _make_actor_kernel(float(max_action), action_dim),
        out_shape=jax.ShapeDtypeStruct((action_dim, batch), out_dtype),
        grid=grid,
        in_specs=[
            pl.BlockSpec((tile_m, in_dim), lambda i: (i, 0)),   # x streams per tile
            resident(w1), resident(b1),
            resident(w2), resident(b2),
            resident(w3), resident(b3),
            resident(wo_t), resident(bo_t),
        ],
        out_specs=pl.BlockSpec((action_dim, tile_m), lambda i: (0, i)),
        compiler_params=pltpu.CompilerParams(
            dimension_semantics=("parallel",),   # megacore sharding on v7x
        ),
    )(x, w1, b1, w2, b2, w3, b3, wo_t, bo_t)

    return out_t.T                          # (batch, action_dim); fuses under jit


def init_params(key, in_dim, hidden, action_dim):
    """Deterministic synthetic parameters (shapes match the PyTorch module)."""
    keys = jax.random.split(key, 8)

    def linear(kw, kb, fan_in, fan_out):
        # PyTorch nn.Linear default init: U(-1/sqrt(fan_in), 1/sqrt(fan_in))
        bound = 1.0 / jnp.sqrt(fan_in)
        w = jax.random.uniform(kw, (fan_in, fan_out), jnp.float32, -bound, bound)
        b = jax.random.uniform(kb, (1, fan_out), jnp.float32, -bound, bound)
        return w, b

    w1, b1 = linear(keys[0], keys[1], in_dim, hidden)
    w2, b2 = linear(keys[2], keys[3], hidden, hidden)
    w3, b3 = linear(keys[4], keys[5], hidden, hidden)
    wo, bo = linear(keys[6], keys[7], hidden, action_dim)
    return (w1, b1, w2, b2, w3, b3, wo, bo)


def reference_forward(x, params, max_action):
    w1, b1, w2, b2, w3, b3, wo, bo = params
    h = jnp.maximum(x @ w1 + b1, 0.0)
    h = jnp.maximum(h @ w2 + b2, 0.0)
    h = jnp.maximum(h @ w3 + b3, 0.0)
    return max_action * jnp.tanh(h @ wo + bo)


if __name__ == "__main__":
    # Shapes consistent with the module:
    #   observation_space['observation'] -> obs_size = 10
    #   observation_space['desired_goal'] -> goal_size = 3
    #   hidden_units = 32, action_space.shape = (4,), max_action = 1.0
    obs_size, goal_size = 10, 3
    hidden_units = 32
    action_dim = 4
    max_action = 1.0
    in_dim = obs_size + goal_size  # forward takes concatenated [obs, goal]

    key = jax.random.PRNGKey(0)
    k_params, k_x1, k_x2 = jax.random.split(key, 3)
    raw_params = init_params(k_params, in_dim, hidden_units, action_dim)

    fwd = jax.jit(lambda xx, pp: actor_forward(xx, pp, max_action))

    # 1) RL inference case (batch=2), f32 compute path: tight check vs. reference.
    params_f32 = prepare_params(raw_params, compute_dtype=jnp.float32)
    x_small = jax.random.normal(k_x1, (2, in_dim), jnp.float32)
    out_small = jax.block_until_ready(fwd(x_small, params_f32))
    ref_small = reference_forward(x_small, raw_params, max_action)
    assert out_small.shape == (2, action_dim)
    assert jnp.allclose(out_small, ref_small, atol=1e-5, rtol=1e-5), "f32 mismatch"

    # 2) Larger batch on the default bf16-streaming path: exercises the tiled
    #    grid with a partial tail block (no input padding).
    params_bf16 = prepare_params(raw_params)  # bf16 compute by default
    x_big = jax.random.normal(k_x2, (1000, in_dim), jnp.float32)
    out_big = jax.block_until_ready(fwd(x_big, params_bf16))
    ref_big = reference_forward(x_big, raw_params, max_action)
    assert out_big.shape == (1000, action_dim)
    assert jnp.allclose(out_big, ref_big, atol=3e-2, rtol=3e-2), "bf16 mismatch"

    print("KERNEL_OK")
</pallas_src>

<mosaic_0001>
module attributes {stable_mosaic.version = 11 : i64} {
  func.func @kernel(%arg0: i32, %arg1: memref<2x13xf32, #tpu.memory_space<vmem>>, %arg2: memref<13x32xf32, #tpu.memory_space<vmem>>, %arg3: memref<1x32xf32, #tpu.memory_space<vmem>>, %arg4: memref<32x32xf32, #tpu.memory_space<vmem>>, %arg5: memref<1x32xf32, #tpu.memory_space<vmem>>, %arg6: memref<32x32xf32, #tpu.memory_space<vmem>>, %arg7: memref<1x32xf32, #tpu.memory_space<vmem>>, %arg8: memref<8x32xf32, #tpu.memory_space<vmem>>, %arg9: memref<4x1xf32, #tpu.memory_space<vmem>>, %arg10: memref<4x2xf32, #tpu.memory_space<vmem>>) attributes {dimension_semantics = [#tpu.dimension_semantics<parallel>], iteration_bounds = array<i64: 1>, scalar_prefetch = 0 : i64, scratch_operands = 0 : i64, tpu.core_type = #tpu.core_type<tc>, window_params = [{transform_indices = @transform_0, window_bounds = array<i64: 2, 13>}, {pipeline_mode = #tpu.pipeline_mode<synchronous>, transform_indices = @transform_1, window_bounds = array<i64: 13, 32>}, {pipeline_mode = #tpu.pipeline_mode<synchronous>, transform_indices = @transform_2, window_bounds = array<i64: 1, 32>}, {pipeline_mode = #tpu.pipeline_mode<synchronous>, transform_indices = @transform_3, window_bounds = array<i64: 32, 32>}, {pipeline_mode = #tpu.pipeline_mode<synchronous>, transform_indices = @transform_4, window_bounds = array<i64: 1, 32>}, {pipeline_mode = #tpu.pipeline_mode<synchronous>, transform_indices = @transform_5, window_bounds = array<i64: 32, 32>}, {pipeline_mode = #tpu.pipeline_mode<synchronous>, transform_indices = @transform_6, window_bounds = array<i64: 1, 32>}, {pipeline_mode = #tpu.pipeline_mode<synchronous>, transform_indices = @transform_7, window_bounds = array<i64: 8, 32>}, {pipeline_mode = #tpu.pipeline_mode<synchronous>, transform_indices = @transform_8, window_bounds = array<i64: 4, 1>}, {transform_indices = @transform_9, window_bounds = array<i64: 4, 2>}]} {
    %c0 = arith.constant 0 : index
    %c0_0 = arith.constant 0 : index
    %0 = vector.load %arg1[%c0, %c0_0] : memref<2x13xf32, #tpu.memory_space<vmem>>, vector<2x13xf32>
    %c0_1 = arith.constant 0 : index
    %c0_2 = arith.constant 0 : index
    %1 = vector.load %arg2[%c0_1, %c0_2] : memref<13x32xf32, #tpu.memory_space<vmem>>, vector<13x32xf32>
    %cst = arith.constant dense<0.000000e+00> : vector<2x32xf32>
    %2 = tpu.matmul %0, %1, %cst {dimension_numbers = #tpu.dot_dimension_numbers<[1], [0], [0], [1], [0, 0, 1, 1], [], []>} : vector<2x13xf32>, vector<13x32xf32>, vector<2x32xf32> -> vector<2x32xf32>
    %c0_3 = arith.constant 0 : index
    %c0_4 = arith.constant 0 : index
    %3 = vector.load %arg3[%c0_3, %c0_4] : memref<1x32xf32, #tpu.memory_space<vmem>>, vector<1x32xf32>
    %4 = vector.broadcast %3 : vector<1x32xf32> to vector<2x32xf32>
    %5 = arith.addf %2, %4 : vector<2x32xf32>
    %cst_5 = arith.constant 0.000000e+00 : f32
    %6 = vector.broadcast %cst_5 : f32 to vector<2x32xf32>
    %7 = arith.maximumf %5, %6 : vector<2x32xf32>
    %c0_6 = arith.constant 0 : index
    %c0_7 = arith.constant 0 : index
    %8 = vector.load %arg4[%c0_6, %c0_7] : memref<32x32xf32, #tpu.memory_space<vmem>>, vector<32x32xf32>
    %cst_8 = arith.constant dense<0.000000e+00> : vector<2x32xf32>
    %9 = tpu.matmul %7, %8, %cst_8 {dimension_numbers = #tpu.dot_dimension_numbers<[1], [0], [0], [1], [0, 0, 1, 1], [], []>} : vector<2x32xf32>, vector<32x32xf32>, vector<2x32xf32> -> vector<2x32xf32>
    %c0_9 = arith.constant 0 : index
    %c0_10 = arith.constant 0 : index
    %10 = vector.load %arg5[%c0_9, %c0_10] : memref<1x32xf32, #tpu.memory_space<vmem>>, vector<1x32xf32>
    %11 = vector.broadcast %10 : vector<1x32xf32> to vector<2x32xf32>
    %12 = arith.addf %9, %11 : vector<2x32xf32>
    %cst_11 = arith.constant 0.000000e+00 : f32
    %13 = vector.broadcast %cst_11 : f32 to vector<2x32xf32>
    %14 = arith.maximumf %12, %13 : vector<2x32xf32>
    %c0_12 = arith.constant 0 : index
    %c0_13 = arith.constant 0 : index
    %15 = vector.load %arg6[%c0_12, %c0_13] : memref<32x32xf32, #tpu.memory_space<vmem>>, vector<32x32xf32>
    %cst_14 = arith.constant dense<0.000000e+00> : vector<2x32xf32>
    %16 = tpu.matmul %14, %15, %cst_14 {dimension_numbers = #tpu.dot_dimension_numbers<[1], [0], [0], [1], [0, 0, 1, 1], [], []>} : vector<2x32xf32>, vector<32x32xf32>, vector<2x32xf32> -> vector<2x32xf32>
    %c0_15 = arith.constant 0 : index
    %c0_16 = arith.constant 0 : index
    %17 = vector.load %arg7[%c0_15, %c0_16] : memref<1x32xf32, #tpu.memory_space<vmem>>, vector<1x32xf32>
    %18 = vector.broadcast %17 : vector<1x32xf32> to vector<2x32xf32>
    %19 = arith.addf %16, %18 : vector<2x32xf32>
    %cst_17 = arith.constant 0.000000e+00 : f32
    %20 = vector.broadcast %cst_17 : f32 to vector<2x32xf32>
    %21 = arith.maximumf %19, %20 : vector<2x32xf32>
    %c0_18 = arith.constant 0 : index
    %c0_19 = arith.constant 0 : index
    %22 = vector.load %arg8[%c0_18, %c0_19] : memref<8x32xf32, #tpu.memory_space<vmem>>, vector<8x32xf32>
    %cst_20 = arith.constant dense<0.000000e+00> : vector<8x2xf32>
    %23 = tpu.matmul %22, %21, %cst_20 {dimension_numbers = #tpu.dot_dimension_numbers<[1], [1], [0], [0], [0, 0, 1, 0], [], []>} : vector<8x32xf32>, vector<2x32xf32>, vector<8x2xf32> -> vector<8x2xf32>
    %24 = vector.extract_strided_slice %23 {offsets = [0, 0], sizes = [4, 2], strides = [1, 1]} : vector<8x2xf32> to vector<4x2xf32>
    %c0_21 = arith.constant 0 : index
    %c0_22 = arith.constant 0 : index
    %25 = vector.load %arg9[%c0_21, %c0_22] : memref<4x1xf32, #tpu.memory_space<vmem>>, vector<4x1xf32>
    %26 = vector.broadcast %25 : vector<4x1xf32> to vector<4x2xf32>
    %27 = arith.addf %24, %26 : vector<4x2xf32>
    %28 = math.tanh %27 : vector<4x2xf32>
    %c0_23 = arith.constant 0 : index
    %c0_24 = arith.constant 0 : index
    %29 = vector.load %arg10[%c0_23, %c0_24] : memref<4x2xf32, #tpu.memory_space<vmem>>, vector<4x2xf32>
    tpu.vector_store %arg10[%c0_23, %c0_24], %28 {strides = array<i32>} : memref<4x2xf32, #tpu.memory_space<vmem>>, vector<4x2xf32>,
    return
  }
  func.func @transform_0(%arg0: i32) -> (i32, i32) {
    %c0_i32 = arith.constant 0 : i32
    %c0_i32_0 = arith.constant 0 : i32
    return %arg0, %c0_i32 : i32, i32
  }
  func.func @transform_1(%arg0: i32) -> (i32, i32) {
    %c0_i32 = arith.constant 0 : i32
    %c0_i32_0 = arith.constant 0 : i32
    %c0_i32_1 = arith.constant 0 : i32
    return %c0_i32, %c0_i32_0 : i32, i32
  }
  func.func @transform_2(%arg0: i32) -> (i32, i32) {
    %c0_i32 = arith.constant 0 : i32
    %c0_i32_0 = arith.constant 0 : i32
    %c0_i32_1 = arith.constant 0 : i32
    return %c0_i32, %c0_i32_0 : i32, i32
  }
  func.func @transform_3(%arg0: i32) -> (i32, i32) {
    %c0_i32 = arith.constant 0 : i32
    %c0_i32_0 = arith.constant 0 : i32
    %c0_i32_1 = arith.constant 0 : i32
    return %c0_i32, %c0_i32_0 : i32, i32
  }
  func.func @transform_4(%arg0: i32) -> (i32, i32) {
    %c0_i32 = arith.constant 0 : i32
    %c0_i32_0 = arith.constant 0 : i32
    %c0_i32_1 = arith.constant 0 : i32
    return %c0_i32, %c0_i32_0 : i32, i32
  }
  func.func @transform_5(%arg0: i32) -> (i32, i32) {
    %c0_i32 = arith.constant 0 : i32
    %c0_i32_0 = arith.constant 0 : i32
    %c0_i32_1 = arith.constant 0 : i32
    return %c0_i32, %c0_i32_0 : i32, i32
  }
  func.func @transform_6(%arg0: i32) -> (i32, i32) {
    %c0_i32 = arith.constant 0 : i32
    %c0_i32_0 = arith.constant 0 : i32
    %c0_i32_1 = arith.constant 0 : i32
    return %c0_i32, %c0_i32_0 : i32, i32
  }
  func.func @transform_7(%arg0: i32) -> (i32, i32) {
    %c0_i32 = arith.constant 0 : i32
    %c0_i32_0 = arith.constant 0 : i32
    %c0_i32_1 = arith.constant 0 : i32
    return %c0_i32, %c0_i32_0 : i32, i32
  }
  func.func @transform_8(%arg0: i32) -> (i32, i32) {
    %c0_i32 = arith.constant 0 : i32
    %c0_i32_0 = arith.constant 0 : i32
    %c0_i32_1 = arith.constant 0 : i32
    return %c0_i32, %c0_i32_0 : i32, i32
  }
  func.func @transform_9(%arg0: i32) -> (i32, i32) {
    %c0_i32 = arith.constant 0 : i32
    %c0_i32_0 = arith.constant 0 : i32
    return %c0_i32, %arg0 : i32, i32
  }
}

</mosaic_0001>

<bundles_post_ra>
// kernel: _lambda_.1
= control target key start
LH: loop header
LB: loop body
LE: loop exit
PB: predicated region body
PF: predicated region fallthrough
CT: control target
= control target key end

     0   :  { %14 = vsyncpa [#allocation3], 0  ;;  %s724_s0 = inlined_call_operand.vmem [shape: f32[2,13], index: 0, kind: input, shape index: {}]   ;;  %s725_s1 = inlined_call_operand.hbm [shape: f32[13,32], index: 1, kind: input, shape index: {}]   ;;  %s726_s2 = inlined_call_operand.vmem [shape: f32[1,32], index: 2, kind: input, shape index: {}]   ;;  %s727_s3 = inlined_call_operand.hbm [shape: f32[32,32], index: 3, kind: input, shape index: {}]   ;;  %s728_s4 = inlined_call_operand.vmem [shape: f32[1,32], index: 4, kind: input, shape index: {}]   ;;  %s729_s5 = inlined_call_operand.hbm [shape: f32[32,32], index: 5, kind: input, shape index: {}]   ;;  %s730_s6 = inlined_call_operand.vmem [shape: f32[1,32], index: 6, kind: input, shape index: {}]   ;;  %s731_s7 = inlined_call_operand.vmem [shape: f32[8,32], index: 7, kind: input, shape index: {}]   ;;  %s732_s8 = inlined_call_operand.vmem [shape: f32[4,1], index: 8, kind: input, shape index: {}]   ;;  %s733_s9 = inlined_call_operand.vmem [shape: f32[4,2], index: 9, kind: output, shape index: {}]  }
   0x1   :  { %15 = vsyncpa [#allocation5], 0  ;;  %s583_s30 = smov [#allocation4]   ;;  %s584_s11 = smov [#allocation2]  }
   0x2   :  { %s37_s10 = sshll.u32 %s583_s30, 4  ;;  %s23_s12 = sshll.u32 %s584_s11, 4  ;;  %s38_s10 = int_to_ptr.vmem [resolvable:$true] %s37_s10  ;;  %s643_s12 = int_to_ptr.vmem [resolvable:$true] %s23_s12 }
   0x3   :  { %s513_s15 = scalar_lea.hbm %s727_s3, 512 }
   0x4   :  { %p514_p0 = scmp.ne.s32.totalorder %s727_s3, %s513_s15  ;;  %p517_p1 = scmp.lt.u32.totalorder %s513_s15, %s727_s3 }
   0x6   :  { %p519_p2 = pnand %p517_p1, %p514_p0 }
   0x8   :  { %522 = shalt.err (!%p519_p2)
}
   0x9   :  { %s523_s20 = scalar_lea.vmem %s38_s10, 512  ;;  %p528_p4 = scmp.lt.s32.totalorder %s38_s10, %s38_s10 }
   0xa   :  { %p524_p3 = scmp.ne.s32.totalorder %s38_s10, %s523_s20  ;;  %p529_p5 = scmp.lt.s32.totalorder %s523_s20, %s523_s20 }
   0xc   :  { %p530_p6 = por %p529_p5, %p528_p4 }
   0xe   :  { %p531_p7 = pnand %p530_p6, %p524_p3 }
  0x10   :  { %534 = shalt.err (!%p531_p7)
}
  0x11   :  { %s585_s21 = smov 128   ;;  %s586_s22 = smov 8  }
  0x12   :  { %43 = dma.hbm_to_vmem [thread:$0]  %s727_s3, 512, %s38_s10, [#allocation5], %s585_s21, %s585_s21, %s586_s22  }
  0x13   :  { %s535_s27 = scalar_lea.hbm %s725_s1, 256 }
  0x14   :  { %p536_p8 = scmp.ne.s32.totalorder %s725_s1, %s535_s27  ;;  %p539_p9 = scmp.lt.u32.totalorder %s535_s27, %s725_s1 }
  0x16   :  { %p541_p10 = pnand %p539_p9, %p536_p8 }
  0x18   :  { %544 = shalt.err (!%p541_p10)
}
  0x19   :  { %s545_s13 = scalar_lea.vmem %s643_s12, 256  ;;  %p550_p12 = scmp.lt.s32.totalorder %s643_s12, %s643_s12 }
  0x1a   :  { %p546_p11 = scmp.ne.s32.totalorder %s643_s12, %s545_s13  ;;  %p551_p13 = scmp.lt.s32.totalorder %s545_s13, %s545_s13 }
  0x1c   :  { %p552_p0 = por %p551_p13, %p550_p12 }
  0x1e   :  { %p553_p1 = pnand %p552_p0, %p546_p11 }
  0x20   :  { %556 = shalt.err (!%p553_p1)
}
  0x21   :  { %29 = dma.hbm_to_vmem [thread:$0]  %s725_s1, 256, %s643_s12, [#allocation3], %s585_s21, %s585_s21, %s586_s22  }
  0x22   :  { %s587_s14 = smov [#allocation6]   ;;  %s557_s18 = scalar_lea.hbm %s729_s5, 512 }
  0x23   :  { %s51_s15 = sshll.u32 %s587_s14, 4  ;;  %p558_p2 = scmp.ne.s32.totalorder %s729_s5, %s557_s18  ;;  %s52_s15 = int_to_ptr.vmem [resolvable:$true] %s51_s15 }
  0x24   :  { %p561_p3 = scmp.lt.u32.totalorder %s557_s18, %s729_s5 }
  0x26   :  { %p563_p4 = pnand %p561_p3, %p558_p2 }
  0x28   :  { %566 = shalt.err (!%p563_p4)
}
  0x29   :  { %s567_s25 = scalar_lea.vmem %s52_s15, 512  ;;  %p572_p6 = scmp.lt.s32.totalorder %s52_s15, %s52_s15 }
  0x2a   :  { %p568_p5 = scmp.ne.s32.totalorder %s52_s15, %s567_s25  ;;  %p573_p7 = scmp.lt.s32.totalorder %s567_s25, %s567_s25 }
  0x2c   :  { %p574_p8 = por %p573_p7, %p572_p6 }
  0x2e   :  { %p575_p9 = pnand %p574_p8, %p568_p5 }
  0x30   :  { %578 = shalt.err (!%p575_p9)
}
  0x31   :  { %57 = dma.hbm_to_vmem [thread:$0]  %s729_s5, 512, %s52_s15, [#allocation5], %s585_s21, %s585_s21, %s586_s22  }
  0x32   :  { %579 = dma.done.wait [#allocation3], 256  }
  0x33   :  { %580 = vsyncadd [#allocation3], 4294967040 }
  0x34   :  { %581 = dma.done.wait [#allocation5], 1024  }
  0x35   :  { %582 = vsyncadd [#allocation5], 4294966272  ;;  %v588_v0 = vmov 0.0|0.0   ;;  %vm589_vm0 = vmmov 0   ;;  %v590_v1 = vmov 0.0   ;;  %vm87_vm1 = vcmask 1044480  }
  0x36   :  { %484 = vmatprep.subr.bf16.mxu0 %v588_v0  ;;  %488 = vmatprep.subr.bf16.mxu1 %v588_v0  ;;  %v74_v2 = vld [vmem:[#allocation2] sm:$0xff]  ;;  %v75_v3 = vld [vmem:[#allocation2 + $0x8] sm:$0x1f]  ;;  %vm591_vm2 = vmmov 1   ;;  %v162_v5 = vld [vmem:[#allocation4] sm:$0xff]  ;;  %vm83_vm4 = vcmask 105472  }
  0x37   :  { %454 = vmatprep.mubr.msk.f32.mxu0 %vm589_vm0, %v590_v1  ;;  %465 = vmatprep.mubr.msk.f32.mxu1 %vm589_vm0, %v590_v1  ;;  %vm486_vm3 = vmpackc.low %vm87_vm1, %vm591_vm2  ;;  %v485_v4 = vpack.c.bf16 %v75_v3, %v74_v2  ;;  %v163_v6 = vld [vmem:[#allocation4 + $0x8] sm:$0xff]  ;;  %v73_v8 = vld [vmem:[%s724_s0] sm:$0x3]  ;;  %vm173_vm5 = vcmask 261120   ;;  %v592_v29 = vmov 0   ;;  %vm418_vm6 = vcmask 11264  }
  0x38   :  { %v489_v7 = vpack.c.bf16 %v163_v6, %v162_v5  ;;  %v164_v9 = vld [vmem:[#allocation4 + $0x10] sm:$0xff]  ;;  %v165_v10 = vld [vmem:[#allocation4 + $0x18] sm:$0xff]  ;;  %v248_v12 = vld [vmem:[#allocation6] sm:$0xff]  ;;  %510 = vset.pattern.permute.xlu0 %v592_v29 }
  0x39   :  { %487 = vmatpush3.bf16.msk.msra.mxu0 %vm486_vm3, %v485_v4  ;;  %v492_v11 = vpack.c.bf16 %v165_v10, %v164_v9  ;;  %v249_v13 = vld [vmem:[#allocation6 + $0x8] sm:$0xff]  ;;  %v426_v15 = vld [vmem:[%s726_s2] ss:$0 sm:$0xff]  ;;  %v251_v21 = vld [vmem:[#allocation6 + $0x18] sm:$0xff] }
  0x3a   :  { %490 = vmatpush3.bf16.msra.mxu1 %v489_v7  ;;  %494 = vmatprep.subr.bf16.mxu0 %v588_v0  ;;  %v495_v14 = vpack.c.bf16 %v249_v13, %v248_v12  ;;  %v250_v20 = vld [vmem:[#allocation6 + $0x10] sm:$0xff] }
  0x3b   :  { %491 = vmatprep.subr.bf16.mxu1 %v588_v0  ;;  %v498_v22 = vpack.c.bf16 %v251_v21, %v250_v20  ;;  %v429_v23 = vld [vmem:[%s728_s4] ss:$0 sm:$0xff] }
  0x3c   :  { %455 = vmatmul.mubr.msk.f32.vlgmr.msra.gmra.mrb[0].mxu0 %vm83_vm4, %v73_v8  ;;  %v410_v28 = vld [vmem:[%s732_s8] sm:$0xf] }
  0x3d   :  { %476 = vmatprep.mubr.msk.f32.mxu0 %vm589_vm0, %v590_v1  ;;  %496 = vmatpush3.bf16.msra.mxu0 %v495_v14  ;;  %v431_v30 = vld [vmem:[%s730_s6] ss:$0 sm:$0xff] }
  0x3e   :  { %493 = vmatpush3.bf16.msra.mxu1 %v492_v11  ;;  %497 = vmatprep.subr.bf16.mxu0 %v588_v0  ;;  %v333_v35 = vld [vmem:[%s731_s7] sm:$0xff] }
  0x3f   :  { %479 = vmatprep.subr.mxu1 %v590_v1  ;;  %413 = vperm.xlu0 %510, %v410_v28  }
  0x41   :  { %499 = vmatpush3.bf16.msra.mxu0 %v498_v22 }
  0xbe   :  { %v414_v36 = vpop.permute.xlu0 %413 }
 0x10f   :  { %v157_v16 = vpop.f32.mrb[0].mxu0 }
 0x110   :  { %v158_v17 = vadd.f32 %v426_v15, %v157_v16  ;;  %v456_v18 = vpop.f32.mrb[1].mxu0 }
 0x112   :  { %v161_v19 = vmax.f32 %v158_v17, 0.0 }
 0x114   :  { %466 = vmatmul.mubr.msk.f32.vlgmr.msra.gmra.mrb[0].mxu1 %vm173_vm5, %v161_v19 }
 0x115   :  { %481 = vmatprep.mubr.msk.f32.mxu1 %vm589_vm0, %v590_v1 }
 0x1e7   :  { %v243_v24 = vpop.f32.mrb[0].mxu1 }
 0x1e8   :  { %v244_v25 = vadd.f32 %v429_v23, %v243_v24  ;;  %v467_v26 = vpop.f32.mrb[1].mxu1 }
 0x1ea   :  { %v247_v27 = vmax.f32 %v244_v25, 0.0 }
 0x1ec   :  { %477 = vmatmul.mubr.msk.f32.vlgmr.msra.gmra.mrb[2].mxu0 %vm173_vm5, %v247_v27 }
 0x2bf   :  { %v328_v31 = vpop.f32.mrb[2].mxu0 }
 0x2c0   :  { %v329_v32 = vadd.f32 %v431_v30, %v328_v31  ;;  %v478_v33 = vpop.f32.mrb[3].mxu0 }
 0x2c2   :  { %v332_v34 = vmax.f32 %v329_v32, 0.0 }
 0x2c4   :  { %480 = vmatpush3.xpose.msk.msra.mxu1 %vm173_vm5, %v332_v34 }
 0x2c7   :  { %482 = vmatmul.mubr.msk.f32.vlgmr.msra.gmra.mrb[2].mxu1 %vm173_vm5, %v333_v35 }
 0x39a   :  { %v406_v37 = vpop.f32.mrb[2].mxu1 }
 0x39b   :  { %v416_v38 = vadd.f32 %v414_v36, %v406_v37  ;;  %v483_v39 = vpop.f32.mrb[3].mxu1 }
 0x39d   :  { %511 = vtanh.f32 %v416_v38 }
 0x3a7   :  { %v512_v40 = vpop.eup %511 }
 0x3a8   :  { %419 = vst.msk [vmem:[%s733_s9] sm:$0xf] %vm418_vm6, %v512_v40 }
 0x3a9   :  { %424 = vsyncpa [#allocation3], 1 }
 0x3aa   :  { %425 = vsyncpa [#allocation5], 1 }

</bundles_post_ra>
